<compile_context>
chip_gen: v6e
topology: v6e:2x2x1
jax: 0.10.0
libtpu: 0.0.40
codegen_flags: <defaults>
</compile_context>

<pallas_src>
import functools

import jax
import jax.numpy as jnp
from jax import lax
from jax.experimental import pallas as pl
from jax.experimental.pallas import tpu as pltpu


def _gating_kernel(x_ref, g_ref, w_ref, b_ref, out_ref):
    # ---- linear: logits = x @ W^T + b  (MXU; memory-bound, MXU is free) ----
    logits = jnp.dot(x_ref[...], w_ref[...],
                     preferred_element_type=jnp.float32) + b_ref[...]

    # ---- perturb with Gumbel noise; tau > 0 does not change the argmax ----
    z = logits + g_ref[...]

    # ---- hard one-hot of argmax along last dim (first-index tie-break,
    # matching torch.max / torch.argmax) ----
    E = z.shape[-1]
    zmax = jnp.max(z, axis=-1, keepdims=True)
    idx = lax.broadcasted_iota(jnp.int32, z.shape, dimension=1)
    cand = jnp.where(z == zmax, idx, E)
    amin = jnp.min(cand, axis=-1, keepdims=True)
    out_ref[...] = (idx == amin).astype(out_ref.dtype)


@functools.partial(jax.jit, static_argnames=("tau",))
def gating_network_forward(pooled_rep, weight_t, bias_2d, gumbel, *, tau=1.0):
    """pooled_rep: [B, D] f32, weight_t: [D, E] f32 (pre-transposed Linear
    weight), bias_2d: [1, E] f32, gumbel: [B, E] f32 Gumbel(0,1) noise.
    Returns one-hot gate weights [B, E] f32 (forward value of hard
    gumbel-softmax).  `tau` is accepted for API parity; the hard forward
    value is independent of any positive temperature."""
    del tau  # argmax is invariant under division by a positive temperature
    B, D = pooled_rep.shape
    E = weight_t.shape[1]

    # Batch tile: whole batch if small, otherwise 512-row tiles (a few hundred
    # KiB double-buffered at D=32/E=4 f32 — far inside VMEM on every gen).
    TB = B if B <= 512 else 512
    grid = (pl.cdiv(B, TB),)

    return pl.pallas_call(
        _gating_kernel,
        out_shape=jax.ShapeDtypeStruct((B, E), jnp.float32),
        grid=grid,
        in_specs=[
            pl.BlockSpec((TB, E if False else D), lambda i: (i, 0)),  # x tile
            pl.BlockSpec((TB, E), lambda i: (i, 0)),                  # gumbel tile
            pl.BlockSpec((D, E), lambda i: (0, 0)),                   # W^T (resident)
            pl.BlockSpec((1, E), lambda i: (0, 0)),                   # bias (resident)
        ],
        out_specs=pl.BlockSpec((TB, E), lambda i: (i, 0)),
        compiler_params=pltpu.CompilerParams(
            dimension_semantics=("parallel",)),
    )(pooled_rep, gumbel, weight_t, bias_2d)


if __name__ == "__main__":
    key = jax.random.PRNGKey(0)
    k_x, k_w, k_b, k_g = jax.random.split(key, 4)

    B = 8          # batch of pooled representations
    d_model = 32
    num_experts = 4
    init_temp = 1.0

    # Deterministic parameter init (PyTorch nn.Linear style uniform bounds).
    bound = 1.0 / (d_model ** 0.5)
    # PyTorch stores the weight as [num_experts, d_model]; transpose ONCE at
    # parameter-creation time so no relayout happens per call.
    weight = jax.random.uniform(k_w, (num_experts, d_model), jnp.float32,
                                -bound, bound)
    weight_t = jnp.asarray(weight.T)                 # [d_model, num_experts]
    bias = jax.random.uniform(k_b, (num_experts,), jnp.float32, -bound, bound)
    bias_2d = bias.reshape(1, num_experts)           # [1, num_experts]

    pooled_rep = jax.random.normal(k_x, (B, d_model), jnp.float32)

    # Gumbel(0,1) noise, one draw per (row, expert) — same distribution as
    # F.gumbel_softmax's internal sampler.
    gumbel = jax.random.gumbel(k_g, (B, num_experts), jnp.float32)

    weights = gating_network_forward(pooled_rep, weight_t, bias_2d, gumbel,
                                     tau=init_temp)
    weights = jax.block_until_ready(weights)

    # Sanity: hard gumbel-softmax forward is a one-hot per row.
    assert weights.shape == (B, num_experts)
    assert jnp.allclose(jnp.sum(weights, axis=-1), 1.0)
    assert bool(jnp.all((weights == 0.0) | (weights == 1.0)))

    # Cross-check against a pure-JAX reference of the same forward.
    ref_logits = pooled_rep @ weight_t + bias_2d
    ref_idx = jnp.argmax(ref_logits + gumbel, axis=-1)
    ref_onehot = jax.nn.one_hot(ref_idx, num_experts, dtype=jnp.float32)
    assert bool(jnp.all(weights == ref_onehot))

    print("KERNEL_OK")
</pallas_src>

<mosaic_0001>
module attributes {stable_mosaic.version = 11 : i64} {
  func.func @_gating_kernel(%arg0: i32, %arg1: memref<8x32xf32, #tpu.memory_space<vmem>>, %arg2: memref<8x4xf32, #tpu.memory_space<vmem>>, %arg3: memref<32x4xf32, #tpu.memory_space<vmem>>, %arg4: memref<1x4xf32, #tpu.memory_space<vmem>>, %arg5: memref<8x4xf32, #tpu.memory_space<vmem>>) attributes {dimension_semantics = [#tpu.dimension_semantics<parallel>], iteration_bounds = array<i64: 1>, scalar_prefetch = 0 : i64, scratch_operands = 0 : i64, tpu.core_type = #tpu.core_type<tc>, window_params = [{transform_indices = @transform_0, window_bounds = array<i64: 8, 32>}, {transform_indices = @transform_1, window_bounds = array<i64: 8, 4>}, {pipeline_mode = #tpu.pipeline_mode<synchronous>, transform_indices = @transform_2, window_bounds = array<i64: 32, 4>}, {pipeline_mode = #tpu.pipeline_mode<synchronous>, transform_indices = @transform_3, window_bounds = array<i64: 1, 4>}, {transform_indices = @transform_4, window_bounds = array<i64: 8, 4>}]} {
    %c0 = arith.constant 0 : index
    %c0_0 = arith.constant 0 : index
    %0 = vector.load %arg1[%c0, %c0_0] : memref<8x32xf32, #tpu.memory_space<vmem>>, vector<8x32xf32>
    %c0_1 = arith.constant 0 : index
    %c0_2 = arith.constant 0 : index
    %1 = vector.load %arg3[%c0_1, %c0_2] : memref<32x4xf32, #tpu.memory_space<vmem>>, vector<32x4xf32>
    %cst = arith.constant dense<0.000000e+00> : vector<8x4xf32>
    %2 = tpu.matmul %0, %1, %cst {dimension_numbers = #tpu.dot_dimension_numbers<[1], [0], [0], [1], [0, 0, 1, 1], [], []>} : vector<8x32xf32>, vector<32x4xf32>, vector<8x4xf32> -> vector<8x4xf32>
    %c0_3 = arith.constant 0 : index
    %c0_4 = arith.constant 0 : index
    %3 = vector.load %arg4[%c0_3, %c0_4] : memref<1x4xf32, #tpu.memory_space<vmem>>, vector<1x4xf32>
    %4 = vector.broadcast %3 : vector<1x4xf32> to vector<8x4xf32>
    %5 = arith.addf %2, %4 : vector<8x4xf32>
    %c0_5 = arith.constant 0 : index
    %c0_6 = arith.constant 0 : index
    %6 = vector.load %arg2[%c0_5, %c0_6] : memref<8x4xf32, #tpu.memory_space<vmem>>, vector<8x4xf32>
    %7 = arith.addf %5, %6 : vector<8x4xf32>
    %cst_7 = arith.constant dense<0xFF800000> : vector<8xf32>
    %8 = vector.multi_reduction <maximumf>, %7, %cst_7 [1] : vector<8x4xf32> to vector<8xf32>
    %9 = vector.shape_cast %8 : vector<8xf32> to vector<8x1xf32>
    %10 = tpu.iota {dimensions = array<i32: 1>} : vector<8x4xi32>
    %11 = vector.broadcast %9 : vector<8x1xf32> to vector<8x4xf32>
    %12 = arith.cmpf oeq, %7, %11 : vector<8x4xf32>
    %c4_i32 = arith.constant 4 : i32
    %13 = vector.broadcast %c4_i32 : i32 to vector<8x4xi32>
    %14 = arith.select %12, %10, %13 : vector<8x4xi1>, vector<8x4xi32>
    %cst_8 = arith.constant dense<2147483647> : vector<8xi32>
    %15 = vector.multi_reduction <minsi>, %14, %cst_8 [1] : vector<8x4xi32> to vector<8xi32>
    %16 = vector.shape_cast %15 : vector<8xi32> to vector<8x1xi32>
    %17 = vector.broadcast %16 : vector<8x1xi32> to vector<8x4xi32>
    %18 = arith.cmpi eq, %10, %17 : vector<8x4xi32>
    %19 = arith.extui %18 : vector<8x4xi1> to vector<8x4xi32>
    %20 = arith.sitofp %19 : vector<8x4xi32> to vector<8x4xf32>
    %c0_9 = arith.constant 0 : index
    %c0_10 = arith.constant 0 : index
    %21 = vector.load %arg5[%c0_9, %c0_10] : memref<8x4xf32, #tpu.memory_space<vmem>>, vector<8x4xf32>
    tpu.vector_store %arg5[%c0_9, %c0_10], %20 {strides = array<i32>} : memref<8x4xf32, #tpu.memory_space<vmem>>, vector<8x4xf32>,
    return
  }
  func.func @transform_0(%arg0: i32) -> (i32, i32) {
    %c0_i32 = arith.constant 0 : i32
    %c0_i32_0 = arith.constant 0 : i32
    return %arg0, %c0_i32 : i32, i32
  }
  func.func @transform_1(%arg0: i32) -> (i32, i32) {
    %c0_i32 = arith.constant 0 : i32
    %c0_i32_0 = arith.constant 0 : i32
    return %arg0, %c0_i32 : i32, i32
  }
  func.func @transform_2(%arg0: i32) -> (i32, i32) {
    %c0_i32 = arith.constant 0 : i32
    %c0_i32_0 = arith.constant 0 : i32
    %c0_i32_1 = arith.constant 0 : i32
    return %c0_i32, %c0_i32_0 : i32, i32
  }
  func.func @transform_3(%arg0: i32) -> (i32, i32) {
    %c0_i32 = arith.constant 0 : i32
    %c0_i32_0 = arith.constant 0 : i32
    %c0_i32_1 = arith.constant 0 : i32
    return %c0_i32, %c0_i32_0 : i32, i32
  }
  func.func @transform_4(%arg0: i32) -> (i32, i32) {
    %c0_i32 = arith.constant 0 : i32
    %c0_i32_0 = arith.constant 0 : i32
    return %arg0, %c0_i32 : i32, i32
  }
}

</mosaic_0001>

<bundles_post_ra>
// kernel: gating_network_forward.1
= control target key start
LH: loop header
LB: loop body
LE: loop exit
PB: predicated region body
PF: predicated region fallthrough
CT: control target
= control target key end

     0   :  { %v157_v0 = vmov 0.0   ;;  %vm158_vm0 = vmmov 0   ;;  %vm29_vm1 = vcmask 261120   ;;  %vm105_vm2 = vcmask 31744   ;;  %s211_s2 = inlined_call_operand.vmem [shape: f32[32,4], index: 2, kind: input, shape index: {}]   ;;  %s212_s0 = inlined_call_operand.vmem [shape: f32[8,32], index: 0, kind: input, shape index: {}]   ;;  %s213_s3 = inlined_call_operand.vmem [shape: f32[1,4], index: 3, kind: input, shape index: {}]   ;;  %s214_s1 = inlined_call_operand.vmem [shape: f32[8,4], index: 1, kind: input, shape index: {}]   ;;  %s215_s4 = inlined_call_operand.vmem [shape: f32[8,4], index: 4, kind: output, shape index: {}]  }
   0x1   :  { %144 = vmatprep.subr.mxu0 %v157_v0  ;;  %v21_v1 = vld [vmem:[%s211_s2 + $0x18] sm:$0xff]  ;;  %v20_v2 = vld [vmem:[%s211_s2 + $0x10] sm:$0xff]  ;;  %152 = vmatprep.mubr.msk.f32.mxu0 %vm158_vm0, %v157_v0  ;;  %v19_v3 = vld [vmem:[%s211_s2 + $0x8] sm:$0xff]  ;;  %v109_v13 = vlaneseq }
   0x2   :  { %145 = vmatpush3.msra.mxu0 %v21_v1  ;;  %v18_v4 = vld [vmem:[%s211_s2] sm:$0xff] }
   0x3   :  { %146 = vmatprep.subr.mxu0 %v157_v0  ;;  %v17_v5 = vld [vmem:[%s212_s0] sm:$0xff]  ;;  %v110_v14 = vand.u32 127, %v109_v13 }
   0x4   :  { %147 = vmatpush3.msra.mxu0 %v20_v2  ;;  %v136_v6 = vld [vmem:[%s213_s3] ss:$0 sm:$0xff] }
   0x5   :  { %148 = vmatprep.subr.mxu0 %v157_v0  ;;  %v103_v8 = vld [vmem:[%s214_s1] sm:$0xff] }
   0x6   :  { %149 = vmatpush3.msra.mxu0 %v19_v3 }
   0x7   :  { %150 = vmatprep.subr.mxu0 %v157_v0 }
   0x8   :  { %151 = vmatpush3.msra.mxu0 %v18_v4 }
   0x9   :  { %153 = vmatmul.mubr.msk.f32.vlgmr.msra.gmra.mxu0 %vm29_vm1, %v17_v5 }
  0xc9   :  { %v99_v7 = vpop.f32.mrf.mxu0 }
  0xca   :  { %v100_v9 = vadd.f32 %v136_v6, %v99_v7 }
  0xcb   :  { %v154_v10 = vpop.f32.mrf.mxu0 }
  0xcc   :  { %v104_v11 = vadd.f32 %v103_v8, %v100_v9 }
  0xce   :  { %v106_v12 = vsel %vm105_vm2, %v104_v11, -inf }
  0xcf   :  { %107 = vmax.xlane.f32.xlu0 %v106_v12 }
 0x158   :  { %v108_v15 = vpop.xlane.xlu0 %107 }
 0x159   :  { %vm111_vm3 = vcmp.eq.f32.partialorder %v104_v11, %v108_v15 }
 0x15a   :  { %v112_v16 = vsel %vm111_vm3, %v110_v14, 4 }
 0x15b   :  { %v113_v17 = vsel %vm105_vm2, %v112_v16, 2147483647 }
 0x15c   :  { %v115_v18 = vshra.s32 %v113_v17, 16  ;;  %v114_v20 = vand.u32 65535, %v113_v17 }
 0x15e   :  { %v117_v19 = vcvt.s32.f32 %v115_v18  ;;  %v116_v22 = vcvt.s32.f32 %v114_v20 }
 0x160   :  { %118 = vmin.xlane.f32.xlu0 %v117_v19 }
 0x1e9   :  { %v119_v21 = vpop.xlane.xlu0 %118 }
 0x1ea   :  { %vm120_vm4 = vcmp.eq.f32.partialorder %v117_v19, %v119_v21  ;;  %v125_v24 = vcvt.f32.s32 %v119_v21 }
 0x1eb   :  { %v121_v23 = vsel %vm120_vm4, %v116_v22, inf }
 0x1ec   :  { %122 = vmin.xlane.f32.xlu1 %v121_v23  ;;  %v126_v26 = vshll.u32 %v125_v24, 16 }
 0x275   :  { %v123_v25 = vpop.xlane.xlu1 %122 }
 0x276   :  { %v124_v27 = vcvt.f32.s32 %v123_v25 }
 0x278   :  { %v127_v28 = vadd.s32 %v126_v26, %v124_v27 }
 0x27a   :  { %vm128_vm5 = vcmp.eq.s32.totalorder %v110_v14, %v127_v28 }
 0x27b   :  { %v138_v29 = vsel %vm128_vm5, 1.0, %v157_v0 }
 0x27c   :  { %131 = vst.msk [vmem:[%s215_s4] sm:$0xff] %vm105_vm2, %v138_v29 }

</bundles_post_ra>
